<compile_context>
chip_gen: v7x
topology: tpu7x:2x2x1
jax: 0.10.0
libtpu: 0.0.40
codegen_flags: <defaults>
</compile_context>

<pallas_src>
import functools

import jax
import jax.numpy as jnp
from jax.experimental import pallas as pl
from jax.experimental.pallas import tpu as pltpu


# --------------------------------- kernels -----------------------------------

def _gce_fused_kernel(x_ref, w1t_ref, b1_ref, w2_ref, b2_ref, o_ref):
    # x_ref: (1, C, HW)  w1t_ref: (C, hid)  b1_ref: (1, hid)
    # w2_ref: (C, hid)   b2_ref:  (C, 1)    o_ref: (1, C, HW)
    hw = x_ref.shape[-1]

    # Global average pool over the lane (spatial) axis, f32 accumulation.
    y = jnp.sum(x_ref[0], axis=-1, keepdims=True, dtype=jnp.float32) * (1.0 / hw)  # (C,1)

    # Tiny MLP on VPU/XLU (broadcast-multiply + reductions); far too small for MXU.
    h = jnp.sum(w1t_ref[...] * y, axis=0, keepdims=True) + b1_ref[...]   # (1, hid)
    h = jnp.maximum(h, 0.0)
    s = jnp.sum(w2_ref[...] * h, axis=-1, keepdims=True) + b2_ref[...]   # (C, 1)
    s = jax.nn.sigmoid(s)

    # Re-read the plane from VMEM (don't keep it live across the MLP) and do the
    # big elementwise pass in x's dtype (bf16 VALU on v6e/v7x; no-op for f32).
    o_ref[0] = (x_ref[0] * s.astype(x_ref.dtype)).astype(o_ref.dtype)


def _gce_scale_kernel(x_ref, w1t_ref, b1_ref, w2_ref, b2_ref, s_ref, acc_ref, *,
                      hw_total):
    # Pass 1 of the tiled fallback: strip-mined global-average-pool + tiny MLP.
    # x_ref: (1, C, hw_tile)   s_ref: (1, C, 1)   acc_ref: (C, 1) f32 scratch
    t = pl.program_id(1)
    hw_tile = x_ref.shape[-1]

    @pl.when(t == 0)
    def _init():
        acc_ref[...] = jnp.zeros_like(acc_ref)

    x = x_ref[0]                                                    # (C, hw_tile)
    if hw_total % hw_tile != 0:
        # Mask out-of-bounds (padded) lanes of the final partial tile.
        col = jax.lax.broadcasted_iota(jnp.int32, x.shape, 1) + t * hw_tile
        x = jnp.where(col < hw_total, x, 0)
    acc_ref[...] += jnp.sum(x, axis=-1, keepdims=True, dtype=jnp.float32)

    @pl.when(t == pl.num_programs(1) - 1)
    def _finalize():
        y = acc_ref[...] * (1.0 / hw_total)                          # (C, 1)
        h = jnp.sum(w1t_ref[...] * y, axis=0, keepdims=True) + b1_ref[...]
        h = jnp.maximum(h, 0.0)
        s = jnp.sum(w2_ref[...] * h, axis=-1, keepdims=True) + b2_ref[...]
        s_ref[0] = jax.nn.sigmoid(s)


def _gce_rescale_kernel(x_ref, s_ref, o_ref):
    # Pass 2 of the tiled fallback: fully tiled channel-wise rescale.
    o_ref[0] = (x_ref[0] * s_ref[0].astype(x_ref.dtype)).astype(o_ref.dtype)


# --------------------------------- wrapper -----------------------------------

def _vmem_budget_bytes() -> int:
    cap = 64 << 20                     # conservative default (v7x per-core VMEM)
    try:
        info = pltpu.get_tpu_info()
        cap = int(getattr(info, "vmem_capacity_bytes", cap))
    except Exception:
        pass
    return int(cap * 0.75)             # headroom for Mosaic-internal scratch


def global_context_extractor(x, w1, b1, w2, b2, *,
                             force_two_pass: bool = False,
                             two_pass_hw_tile=None):
    """Forward pass of GlobalContextExtractor for NCHW x.

    w1: (C//r, C), b1: (C//r,), w2: (C, C//r), b2: (C,)  -- PyTorch Linear layout.
    """
    N, C, H, W = x.shape
    HW = H * W
    hidden = w1.shape[0]
    itemsize = jnp.dtype(x.dtype).itemsize

    x_flat = x.reshape(N, C, HW)                    # lane-dense spatial axis
    w1t = w1.T.astype(jnp.float32)                  # (C, hid): no in-kernel transposes
    b1_row = b1.reshape(1, hidden).astype(jnp.float32)
    w2f = w2.astype(jnp.float32)                    # (C, hid)
    b2_col = b2.reshape(C, 1).astype(jnp.float32)

    budget = _vmem_budget_bytes()
    plane_bytes = C * HW * itemsize
    weight_bytes = (2 * C * hidden + hidden + C) * 4
    # Fused path: one (in + out) plane, double-buffered, plus resident weights.
    fused_need = 4 * plane_bytes + 2 * weight_bytes + (1 << 20)
    use_two_pass = (
        force_two_pass
        or int(fused_need * 1.2) > budget
        # N == 1 gives the fused path a single grid step: no pipelining and only
        # one v7x TensorCore busy -> prefer the tiled path for non-trivial planes.
        or (N == 1 and plane_bytes > (8 << 20))
    )

    if not use_two_pass:
        vmem_limit = int(min(budget, max(fused_need, 16 << 20)))
        out_flat = pl.pallas_call(
            _gce_fused_kernel,
            out_shape=jax.ShapeDtypeStruct((N, C, HW), x.dtype),
            grid_spec=pltpu.PrefetchScalarGridSpec(
                num_scalar_prefetch=0,
                grid=(N,),
                in_specs=[
                    pl.BlockSpec((1, C, HW), lambda n: (n, 0, 0)),   # x plane
                    pl.BlockSpec((C, hidden), lambda n: (0, 0)),      # fc1 weight^T
                    pl.BlockSpec((1, hidden), lambda n: (0, 0)),      # fc1 bias
                    pl.BlockSpec((C, hidden), lambda n: (0, 0)),      # fc2 weight
                    pl.BlockSpec((C, 1), lambda n: (0, 0)),           # fc2 bias
                ],
                out_specs=pl.BlockSpec((1, C, HW), lambda n: (n, 0, 0)),
            ),
            compiler_params=pltpu.CompilerParams(
                dimension_semantics=("parallel",),
                vmem_limit_bytes=vmem_limit),
            cost_estimate=pl.CostEstimate(
                flops=int(3 * N * C * HW + 4 * N * C * hidden),
                transcendentals=int(N * C),
                bytes_accessed=int(2 * N * plane_bytes + weight_bytes)),
            input_output_aliases={0: 0},            # donate x's buffer to the output
        )(x_flat, w1t, b1_row, w2f, b2_col)
        return out_flat.reshape(N, C, H, W)

    # ----- Two-pass tiled fallback (large planes / v7x 64 MiB VMEM / N == 1) -----
    if two_pass_hw_tile is not None:
        hw_tile = int(two_pass_hw_tile)
    else:
        hw_tile = max(1, (2 << 20) // max(1, C * itemsize))     # ~2 MiB x blocks
    if hw_tile >= HW or HW < 128:
        hw_tile = HW                                             # full dim allowed
    else:
        hw_tile = max(128, (hw_tile // 128) * 128)               # lane-aligned tiles
    num_tiles = pl.cdiv(HW, hw_tile)

    blk_bytes = C * hw_tile * itemsize
    vmem_limit = int(min(budget,
                         max(4 * blk_bytes + 2 * weight_bytes + (2 << 20), 16 << 20)))

    # Pass 1: global-average-pool reduction + tiny MLP -> per-(batch, channel) scale.
    scale = pl.pallas_call(
        functools.partial(_gce_scale_kernel, hw_total=HW),
        out_shape=jax.ShapeDtypeStruct((N, C, 1), jnp.float32),
        grid_spec=pltpu.PrefetchScalarGridSpec(
            num_scalar_prefetch=0,
            grid=(N, num_tiles),
            in_specs=[
                pl.BlockSpec((1, C, hw_tile), lambda n, t: (n, 0, t)),
                pl.BlockSpec((C, hidden), lambda n, t: (0, 0)),
                pl.BlockSpec((1, hidden), lambda n, t: (0, 0)),
                pl.BlockSpec((C, hidden), lambda n, t: (0, 0)),
                pl.BlockSpec((C, 1), lambda n, t: (0, 0)),
            ],
            out_specs=pl.BlockSpec((1, C, 1), lambda n, t: (n, 0, 0)),
            scratch_shapes=[pltpu.VMEM((C, 1), jnp.float32)],
        ),
        compiler_params=pltpu.CompilerParams(
            dimension_semantics=("parallel", "arbitrary"),
            vmem_limit_bytes=vmem_limit),
        cost_estimate=pl.CostEstimate(
            flops=int(N * C * HW + 4 * N * C * hidden),
            transcendentals=int(N * C),
            bytes_accessed=int(N * plane_bytes + weight_bytes + N * C * 4)),
    )(x_flat, w1t, b1_row, w2f, b2_col)

    # Pass 2: fully tiled, fully parallel channel-wise rescale.
    out_flat = pl.pallas_call(
        _gce_rescale_kernel,
        out_shape=jax.ShapeDtypeStruct((N, C, HW), x.dtype),
        grid_spec=pltpu.PrefetchScalarGridSpec(
            num_scalar_prefetch=0,
            grid=(N, num_tiles),
            in_specs=[
                pl.BlockSpec((1, C, hw_tile), lambda n, t: (n, 0, t)),
                pl.BlockSpec((1, C, 1), lambda n, t: (n, 0, 0)),
            ],
            out_specs=pl.BlockSpec((1, C, hw_tile), lambda n, t: (n, 0, t)),
        ),
        compiler_params=pltpu.CompilerParams(
            dimension_semantics=("parallel", "parallel"),
            vmem_limit_bytes=vmem_limit),
        cost_estimate=pl.CostEstimate(
            flops=int(N * C * HW),
            transcendentals=0,
            bytes_accessed=int(2 * N * plane_bytes + N * C * 4)),
        input_output_aliases={0: 0},
    )(x_flat, scale)

    return out_flat.reshape(N, C, H, W)


def _reference_gce(x, w1, b1, w2, b2):
    """Pure-JAX reference matching the PyTorch module."""
    y = jnp.mean(x, axis=(2, 3))                                # (N, C)
    h = jax.nn.relu(y @ w1.T + b1)                              # (N, C//r)
    s = jax.nn.sigmoid(h @ w2.T + b2)                           # (N, C)
    return x * s[:, :, None, None]


if __name__ == "__main__":
    # TODO(synk): torch.utils.checkpoint is a training-time recompute wrapper with
    # no effect on forward semantics; it is intentionally not modeled.
    key = jax.random.PRNGKey(0)
    k_x, k_w1, k_b1, k_w2, k_b2, k_x2 = jax.random.split(key, 6)

    # channels >= reduction is required by the module's assert.
    N, C, H, W = 2, 32, 16, 16
    reduction = 16
    hidden = C // reduction

    x = jax.random.normal(k_x, (N, C, H, W), dtype=jnp.float32)
    w1 = jax.random.normal(k_w1, (hidden, C), dtype=jnp.float32) * 0.1
    b1 = jax.random.normal(k_b1, (hidden,), dtype=jnp.float32) * 0.1
    w2 = jax.random.normal(k_w2, (C, hidden), dtype=jnp.float32) * 0.1
    b2 = jax.random.normal(k_b2, (C,), dtype=jnp.float32) * 0.1

    gce = jax.jit(global_context_extractor,
                  static_argnames=("force_two_pass", "two_pass_hw_tile"))

    ref = _reference_gce(x, w1, b1, w2, b2)

    # Fused single-pass path (one HBM read + one write).
    out_fused = jax.block_until_ready(gce(x, w1, b1, w2, b2))
    assert out_fused.shape == (N, C, H, W), out_fused.shape
    assert jnp.allclose(out_fused, ref, atol=1e-5, rtol=1e-5), "fused path mismatch"

    # Tiled two-pass fallback (the path used for VMEM-exceeding planes / N == 1).
    out_tiled = jax.block_until_ready(
        gce(x, w1, b1, w2, b2, force_two_pass=True, two_pass_hw_tile=128))
    assert jnp.allclose(out_tiled, ref, atol=1e-5, rtol=1e-5), "tiled path mismatch"

    # Non-multiple-of-128 spatial size + N == 1 exercises the masked remainder
    # tile and the clipped partial output writeback on the fallback path.
    x2 = jax.random.normal(k_x2, (1, C, 12, 12), dtype=jnp.float32)
    ref2 = _reference_gce(x2, w1, b1, w2, b2)
    out2 = jax.block_until_ready(
        gce(x2, w1, b1, w2, b2, force_two_pass=True, two_pass_hw_tile=128))
    assert jnp.allclose(out2, ref2, atol=1e-5, rtol=1e-5), "remainder-tile mismatch"

    print("KERNEL_OK")
</pallas_src>

<mosaic_0001>
module attributes {stable_mosaic.version = 11 : i64} {
  func.func @_gce_fused_kernel(%arg0: i32, %arg1: memref<1x32x256xf32, #tpu.memory_space<vmem>>, %arg2: memref<32x2xf32, #tpu.memory_space<vmem>>, %arg3: memref<1x2xf32, #tpu.memory_space<vmem>>, %arg4: memref<32x2xf32, #tpu.memory_space<vmem>>, %arg5: memref<32x1xf32, #tpu.memory_space<vmem>>, %arg6: memref<1x32x256xf32, #tpu.memory_space<vmem>>) attributes {dimension_semantics = [#tpu.dimension_semantics<parallel>], iteration_bounds = array<i64: 2>, scalar_prefetch = 0 : i64, scratch_operands = 0 : i64, tpu.core_type = #tpu.core_type<tc>, window_params = [{transform_indices = @transform_0, window_bounds = array<i64: 1, 32, 256>}, {pipeline_mode = #tpu.pipeline_mode<synchronous>, transform_indices = @transform_1, window_bounds = array<i64: 32, 2>}, {pipeline_mode = #tpu.pipeline_mode<synchronous>, transform_indices = @transform_2, window_bounds = array<i64: 1, 2>}, {pipeline_mode = #tpu.pipeline_mode<synchronous>, transform_indices = @transform_3, window_bounds = array<i64: 32, 2>}, {pipeline_mode = #tpu.pipeline_mode<synchronous>, transform_indices = @transform_4, window_bounds = array<i64: 32, 1>}, {transform_indices = @transform_5, window_bounds = array<i64: 1, 32, 256>}]} {
    %c0 = arith.constant 0 : index
    %c0_0 = arith.constant 0 : index
    %c0_1 = arith.constant 0 : index
    %0 = vector.load %arg1[%c0, %c0_0, %c0_1] : memref<1x32x256xf32, #tpu.memory_space<vmem>>, vector<1x32x256xf32>
    %1 = vector.shape_cast %0 : vector<1x32x256xf32> to vector<32x256xf32>
    %cst = arith.constant dense<0.000000e+00> : vector<32xf32>
    %2 = vector.multi_reduction <add>, %1, %cst [1] : vector<32x256xf32> to vector<32xf32>
    %3 = vector.shape_cast %2 : vector<32xf32> to vector<32x1xf32>
    %cst_2 = arith.constant 3.906250e-03 : f32
    %4 = vector.broadcast %cst_2 : f32 to vector<32x1xf32>
    %5 = arith.mulf %3, %4 : vector<32x1xf32>
    %c0_3 = arith.constant 0 : index
    %c0_4 = arith.constant 0 : index
    %6 = vector.load %arg2[%c0_3, %c0_4] : memref<32x2xf32, #tpu.memory_space<vmem>>, vector<32x2xf32>
    %7 = vector.broadcast %5 : vector<32x1xf32> to vector<32x2xf32>
    %8 = arith.mulf %6, %7 : vector<32x2xf32>
    %cst_5 = arith.constant dense<0.000000e+00> : vector<2xf32>
    %9 = vector.multi_reduction <add>, %8, %cst_5 [0] : vector<32x2xf32> to vector<2xf32>
    %10 = vector.shape_cast %9 : vector<2xf32> to vector<1x2xf32>
    %c0_6 = arith.constant 0 : index
    %c0_7 = arith.constant 0 : index
    %11 = vector.load %arg3[%c0_6, %c0_7] : memref<1x2xf32, #tpu.memory_space<vmem>>, vector<1x2xf32>
    %12 = arith.addf %10, %11 : vector<1x2xf32>
    %cst_8 = arith.constant 0.000000e+00 : f32
    %13 = vector.broadcast %cst_8 : f32 to vector<1x2xf32>
    %14 = arith.maximumf %12, %13 : vector<1x2xf32>
    %c0_9 = arith.constant 0 : index
    %c0_10 = arith.constant 0 : index
    %15 = vector.load %arg4[%c0_9, %c0_10] : memref<32x2xf32, #tpu.memory_space<vmem>>, vector<32x2xf32>
    %16 = vector.broadcast %14 : vector<1x2xf32> to vector<32x2xf32>
    %17 = arith.mulf %15, %16 : vector<32x2xf32>
    %cst_11 = arith.constant dense<0.000000e+00> : vector<32xf32>
    %18 = vector.multi_reduction <add>, %17, %cst_11 [1] : vector<32x2xf32> to vector<32xf32>
    %19 = vector.shape_cast %18 : vector<32xf32> to vector<32x1xf32>
    %c0_12 = arith.constant 0 : index
    %c0_13 = arith.constant 0 : index
    %20 = vector.load %arg5[%c0_12, %c0_13] : memref<32x1xf32, #tpu.memory_space<vmem>>, vector<32x1xf32>
    %21 = arith.addf %19, %20 : vector<32x1xf32>
    %22 = arith.negf %21 : vector<32x1xf32>
    %23 = math.exp %22 : vector<32x1xf32>
    %cst_14 = arith.constant 1.000000e+00 : f32
    %24 = vector.broadcast %cst_14 : f32 to vector<32x1xf32>
    %25 = arith.addf %24, %23 : vector<32x1xf32>
    %26 = arith.divf %24, %25 : vector<32x1xf32>
    %c0_15 = arith.constant 0 : index
    %c0_16 = arith.constant 0 : index
    %c0_17 = arith.constant 0 : index
    %27 = vector.load %arg1[%c0_15, %c0_16, %c0_17] : memref<1x32x256xf32, #tpu.memory_space<vmem>>, vector<1x32x256xf32>
    %28 = vector.shape_cast %27 : vector<1x32x256xf32> to vector<32x256xf32>
    %29 = vector.broadcast %26 : vector<32x1xf32> to vector<32x256xf32>
    %30 = arith.mulf %28, %29 : vector<32x256xf32>
    %c0_18 = arith.constant 0 : index
    %c0_19 = arith.constant 0 : index
    %c0_20 = arith.constant 0 : index
    %31 = vector.load %arg6[%c0_18, %c0_19, %c0_20] : memref<1x32x256xf32, #tpu.memory_space<vmem>>, vector<1x32x256xf32>
    %32 = vector.shape_cast %31 : vector<1x32x256xf32> to vector<32x256xf32>
    %33 = vector.shape_cast %30 : vector<32x256xf32> to vector<1x32x256xf32>
    tpu.vector_store %arg6[%c0_18, %c0_19, %c0_20], %33 {strides = array<i32>} : memref<1x32x256xf32, #tpu.memory_space<vmem>>, vector<1x32x256xf32>,
    return
  }
  func.func @transform_0(%arg0: i32) -> (i32, i32, i32) {
    %c0_i32 = arith.constant 0 : i32
    %c0_i32_0 = arith.constant 0 : i32
    %c0_i32_1 = arith.constant 0 : i32
    return %arg0, %c0_i32, %c0_i32_0 : i32, i32, i32
  }
  func.func @transform_1(%arg0: i32) -> (i32, i32) {
    %c0_i32 = arith.constant 0 : i32
    %c0_i32_0 = arith.constant 0 : i32
    %c0_i32_1 = arith.constant 0 : i32
    return %c0_i32, %c0_i32_0 : i32, i32
  }
  func.func @transform_2(%arg0: i32) -> (i32, i32) {
    %c0_i32 = arith.constant 0 : i32
    %c0_i32_0 = arith.constant 0 : i32
    %c0_i32_1 = arith.constant 0 : i32
    return %c0_i32, %c0_i32_0 : i32, i32
  }
  func.func @transform_3(%arg0: i32) -> (i32, i32) {
    %c0_i32 = arith.constant 0 : i32
    %c0_i32_0 = arith.constant 0 : i32
    %c0_i32_1 = arith.constant 0 : i32
    return %c0_i32, %c0_i32_0 : i32, i32
  }
  func.func @transform_4(%arg0: i32) -> (i32, i32) {
    %c0_i32 = arith.constant 0 : i32
    %c0_i32_0 = arith.constant 0 : i32
    %c0_i32_1 = arith.constant 0 : i32
    return %c0_i32, %c0_i32_0 : i32, i32
  }
  func.func @transform_5(%arg0: i32) -> (i32, i32, i32) {
    %c0_i32 = arith.constant 0 : i32
    %c0_i32_0 = arith.constant 0 : i32
    %c0_i32_1 = arith.constant 0 : i32
    return %arg0, %c0_i32, %c0_i32_0 : i32, i32, i32
  }
}

</mosaic_0001>

<bundles_post_ra>
// kernel: global_context_extractor.1
= control target key start
LH: loop header
LB: loop body
LE: loop exit
PB: predicated region body
PF: predicated region fallthrough
CT: control target
= control target key end

     0   :  { %s504_s18 = smov 0   ;;  %s607_s0 = inlined_call_operand.vmem [shape: f32[2,32,256], index: 0, kind: input, shape index: {}, may-alias: {0,5}]   ;;  %s608_s1 = inlined_call_operand.vmem [shape: f32[32,2], index: 1, kind: input, shape index: {}]   ;;  %s609_s2 = inlined_call_operand.vmem [shape: f32[1,2], index: 2, kind: input, shape index: {}]   ;;  %s610_s3 = inlined_call_operand.vmem [shape: f32[32,2], index: 3, kind: input, shape index: {}]   ;;  %s611_s4 = inlined_call_operand.vmem [shape: f32[32,1], index: 4, kind: input, shape index: {}]   ;;  %s612_s5 = inlined_call_operand.vmem [shape: f32[2,32,256], index: 5, kind: output, shape index: {}, may-alias: {0,5}]  }
   0x1 LB: > { %s421_s19 = sadd.s32 4294967295, %s471_s18   ;;  %p425_p0 = scmp.ge.s32.totalorder %s471_s18, 1  ;;  %s471_s18 = sphi %s504_s18, %s15_s18  }
   0x2   : > { %p187_p1 = scmp.lt.s32.totalorder %s471_s18, 3 }
   0x4   : > { %p188_p2 = pnand %p425_p0, %p187_p1 }
   0x5   : > { %p215_p3 = scmp.lt.s32.totalorder (!%p188_p2), %s421_s19, 1  ;;  %v249_v15 = vld [vmem:[%s608_s1] sm:$0xff] (!%p188_p2)  ;;  %v251_v17 = vld [vmem:[%s608_s1 + $0x10] sm:$0xff] (!%p188_p2)  ;;  %v250_v18 = vld [vmem:[%s608_s1 + $0x8] sm:$0xff] (!%p188_p2)  ;;  %vm257_vm0 = vcmask (!%p188_p2), 15360   ;;  %v278_v38 = vlaneseq (!%p188_p2)  ;;  %v473_v60 = vmov (!%p188_p2), 0  }
   0x6   : > { %191 = sbr.rel (%p188_p2) target bundleno = 507 (0x1fb), region = 40  ;;  %v252_v22 = vld [vmem:[%s608_s1 + $0x18] sm:$0xff] (!%p188_p2)  ;;  %v271_v42 = vld [vmem:[%s609_s2] sm:$0x1] (!%p188_p2)  ;;  %v275_v47 = vld [vmem:[%s610_s3 + $0x8] sm:$0xff] (!%p188_p2)  ;;  %448 = vset.pattern.permute.xlu1 (!%p188_p2), %v473_v60  ;;  %447 = vset.pattern.permute.xlu0 (!%p188_p2), %v473_v60 }
   0x7   : > { %v279_v41 = vshrl.u32 (!%p188_p2), %v278_v38, 7  ;;  %v274_v48 = vld [vmem:[%s610_s3] sm:$0xff] (!%p188_p2)  ;;  %v277_v50 = vld [vmem:[%s610_s3 + $0x18] sm:$0xff] (!%p188_p2)  ;;  %v276_v51 = vld [vmem:[%s610_s3 + $0x10] sm:$0xff] (!%p188_p2) }
   0x8   : > { %v299_v61 = vld [vmem:[%s611_s4 + $0x8] sm:$0xff] (!%p188_p2)  ;;  %v298_v62 = vld [vmem:[%s611_s4] sm:$0xff] (!%p188_p2) }
   0x9   : > { %v280_v45 = vsub.s32 (!%p188_p2), 0, %v279_v41 }
   0xd   : > { %s614_s19 = smov (!%p215_p3, %s421_s19), 1 }
   0xe   : > { %s436_s20 = sshll.u32 %s614_s19, 6 }
   0xf   : > { %s219_s23 = scalar_lea.vmem %s607_s0, %s436_s20  ;;  %s224_s30 = scalar_lea.vmem %s612_s5, %s436_s20 }
  0x10   : > { %v520_v0 = vld [vmem:[%s219_s23] sm:$0xff]  ;;  %v522_v1 = vld [vmem:[%s219_s23 + $0x8] sm:$0xff]  ;;  %v530_v5 = vld [vmem:[%s219_s23 + $0x10] sm:$0xff] }
  0x11   : > { %v524_v2 = vld [vmem:[%s219_s23 + $0x20] sm:$0xff]  ;;  %v233_v3 = vadd.f32 %v522_v1, %v520_v0  ;;  %v528_v4 = vld [vmem:[%s219_s23 + $0x28] sm:$0xff]  ;;  %v532_v6 = vld [vmem:[%s219_s23 + $0x18] sm:$0xff] }
  0x12   : > { %v239_v7 = vadd.f32 %v528_v4, %v524_v2  ;;  %v536_v8 = vld [vmem:[%s219_s23 + $0x30] sm:$0xff]  ;;  %v538_v9 = vld [vmem:[%s219_s23 + $0x38] sm:$0xff]  ;;  %v236_v10 = vadd.f32 %v532_v6, %v530_v5 }
  0x13   : > { %234 = vadd.xlane.f32.xlu0 %v233_v3  ;;  %v242_v11 = vadd.f32 %v538_v9, %v536_v8 }
  0x14   : > { %240 = vadd.xlane.f32.xlu1 %v239_v7 }
  0x17   : > { %237 = vadd.xlane.f32.xlu0 %v236_v10 }
  0x18   : > { %243 = vadd.xlane.f32.xlu1 %v242_v11  ;;  %v301_v11 = vld [vmem:[%s611_s4 + $0x18] sm:$0xff] }
  0xa0   : > { %v235_v12 = vpop.xlane.xlu0 %234 }
  0xa1   : > { %v245_v13 = vmul.f32 0.00390625, %v235_v12  ;;  %v241_v14 = vpop.xlane.xlu1 %240  ;;  %v300_v12 = vld [vmem:[%s611_s4 + $0x10] sm:$0xff] }
  0xa2   : > { %v247_v16 = vmul.f32 0.00390625, %v241_v14 }
  0xa3   : > { %v253_v20 = vmul.f32 %v249_v15, %v245_v13 }
  0xa4   : > { %v238_v19 = vpop.xlane.xlu0 %237  ;;  %v255_v25 = vmul.f32 %v251_v17, %v247_v16 }
  0xa5   : > { %v246_v21 = vmul.f32 0.00390625, %v238_v19  ;;  %v244_v23 = vpop.xlane.xlu1 %243  ;;  %v258_v28 = vsel %vm257_vm0, %v253_v20, 0.0 }
  0xa6   : > { %v248_v24 = vmul.f32 0.00390625, %v244_v23  ;;  %v261_v31 = vsel %vm257_vm0, %v255_v25, 0.0 }
  0xa7   : > { %v254_v26 = vmul.f32 %v250_v18, %v246_v21 }
  0xa8   : > { %v256_v27 = vmul.f32 %v252_v22, %v248_v24 }
  0xa9   : > { %v259_v29 = vsel %vm257_vm0, %v254_v26, 0.0 }
  0xaa   : > { %v260_v30 = vadd.f32 %v259_v29, %v258_v28  ;;  %v263_v32 = vsel %vm257_vm0, %v256_v27, 0.0 }
  0xac   : > { %v262_v33 = vadd.f32 %v261_v31, %v260_v30 }
  0xae   : > { %v264_v34 = vadd.f32 %v263_v32, %v262_v33 }
  0xb0   : > { %v265_v35 = vrot.slane %v264_v34, 4 }
  0xb2   : > { %v266_v36 = vadd.f32 %v265_v35, %v264_v34 }
  0xb4   : > { %v267_v37 = vrot.slane %v266_v36, 2 }
  0xb6   : > { %v268_v39 = vadd.f32 %v267_v37, %v266_v36 }
  0xb8   : > { %v269_v40 = vrot.slane %v268_v39, 1 }
  0xba   : > { %v270_v43 = vadd.f32 %v269_v40, %v268_v39 }
  0xbc   : > { %v272_v44 = vadd.f32 %v271_v42, %v270_v43 }
  0xbe   : > { %v273_v46 = vmax.f32 %v272_v44, 0.0 }
  0xc0   : > { %v281_v49 = vrot.slane %v273_v46, %v280_v45 }
  0xc2   : > { %v283_v52 = vmul.f32 %v281_v49, %v275_v47  ;;  %v282_v53 = vmul.f32 %v281_v49, %v274_v48  ;;  %v285_v56 = vmul.f32 %v281_v49, %v277_v50  ;;  %v284_v57 = vmul.f32 %v281_v49, %v276_v51 }
  0xc4   : > { %v289_v54 = vsel %vm257_vm0, %v283_v52, 0.0  ;;  %v286_v55 = vsel %vm257_vm0, %v282_v53, 0.0  ;;  %v295_v58 = vsel %vm257_vm0, %v285_v56, 0.0  ;;  %v292_v59 = vsel %vm257_vm0, %v284_v57, 0.0 }
  0xc5   : > { %290 = vadd.xlane.f32.xlu1 %v289_v54  ;;  %287 = vadd.xlane.f32.xlu0 %v286_v55 }
  0xc9   : > { %296 = vadd.xlane.f32.xlu1 %v295_v58  ;;  %293 = vadd.xlane.f32.xlu0 %v292_v59 }
 0x152   : > { %v291_v63 = vpop.xlane.xlu1 %290  ;;  %v288_v3 = vpop.xlane.xlu0 %287 }
 0x153   : > { %v303_v7 = vadd.f32 %v299_v61, %v291_v63  ;;  %v302_v10 = vadd.f32 %v298_v62, %v288_v3 }
 0x155   : > { %v431_v13 = vmul.f32 -1.442695, %v303_v7  ;;  %v430_v14 = vmul.f32 -1.442695, %v302_v10 }
 0x156   : > { %v297_v15 = vpop.xlane.xlu1 %296  ;;  %v294_v16 = vpop.xlane.xlu0 %293 }
 0x157   : > { %449 = vpow2.f32 %v431_v13  ;;  %v305_v17 = vadd.f32 %v301_v11, %v297_v15  ;;  %v304_v18 = vadd.f32 %v300_v12, %v294_v16 }
 0x158   : > { %451 = vpow2.f32 %v430_v14 }
 0x159   : > { %v433_v19 = vmul.f32 -1.442695, %v305_v17  ;;  %v432_v20 = vmul.f32 -1.442695, %v304_v18 }
 0x15b   : > { %453 = vpow2.f32 %v433_v19 }
 0x15c   : > { %455 = vpow2.f32 %v432_v20 }
 0x161   : > { %v450_v21 = vpop.eup %449 }
 0x162   : > { %v452_v22 = vpop.eup %451  ;;  %v319_v23 = vadd.f32 1.0, %v450_v21 }
 0x163   : > { %v318_v24 = vadd.f32 1.0, %v452_v22 }
 0x164   : > { %457 = vrcp.f32 %v319_v23 }
 0x165   : > { %v454_v25 = vpop.eup %453  ;;  %459 = vrcp.f32 %v318_v24 }
 0x166   : > { %v456_v26 = vpop.eup %455  ;;  %v321_v28 = vadd.f32 1.0, %v454_v25 }
 0x167   : > { %v320_v27 = vadd.f32 1.0, %v456_v26 }
 0x169   : > { %461 = vrcp.f32 %v320_v27 }
 0x16a   : > { %463 = vrcp.f32 %v321_v28 }
 0x16e   : > { %v458_v29 = vpop.eup %457 }
 0x16f   : > { %v460_v30 = vpop.eup %459  ;;  %337 = vperm.xlu1 %448, %v458_v29  }
 0x170   : > { %332 = vperm.xlu0 %447, %v460_v30  }
 0x173   : > { %v462_v31 = vpop.eup %461 }
 0x174   : > { %342 = vperm.xlu1 %448, %v462_v31   ;;  %v464_v32 = vpop.eup %463 }
 0x178   : > { %347 = vperm.xlu1 %448, %v464_v32  }
 0x1ee   : > { %v338_v33 = vpop.permute.xlu1 %337 }
 0x1ef   : > { %v352_v34 = vmul.f32 %v338_v33, %v530_v5  ;;  %v353_v35 = vmul.f32 %v338_v33, %v532_v6  ;;  %v333_v36 = vpop.permute.xlu0 %332 }
 0x1f0   : > { %v350_v37 = vmul.f32 %v333_v36, %v520_v0  ;;  %v351_v38 = vmul.f32 %v333_v36, %v522_v1 }
 0x1f1   : > { %360 = vst [vmem:[%s224_s30 + $0x10] sm:$0xff] %v352_v34  ;;  %361 = vst [vmem:[%s224_s30 + $0x18] sm:$0xff] %v353_v35 }
 0x1f2   : > { %358 = vst [vmem:[%s224_s30] sm:$0xff] %v350_v37  ;;  %359 = vst [vmem:[%s224_s30 + $0x8] sm:$0xff] %v351_v38 }
 0x1f3   : > { %v343_v39 = vpop.permute.xlu1 %342 }
 0x1f4   : > { %v354_v40 = vmul.f32 %v343_v39, %v524_v2  ;;  %v355_v41 = vmul.f32 %v343_v39, %v528_v4 }
 0x1f6   : > { %362 = vst [vmem:[%s224_s30 + $0x20] sm:$0xff] %v354_v40  ;;  %363 = vst [vmem:[%s224_s30 + $0x28] sm:$0xff] %v355_v41 }
 0x1f7   : > { %v348_v42 = vpop.permute.xlu1 %347 }
 0x1f8   : > { %v356_v5 = vmul.f32 %v348_v42, %v536_v8  ;;  %v357_v6 = vmul.f32 %v348_v42, %v538_v9 }
 0x1fa   : > { %364 = vst [vmem:[%s224_s30 + $0x30] sm:$0xff] %v356_v5  ;;  %365 = vst [vmem:[%s224_s30 + $0x38] sm:$0xff] %v357_v6 }
 0x1fb PF: > { %s15_s18 = sadd.s32 1, %s471_s18  }
 0x1fc   : > { %p12_p4 = scmp.ge.s32.totalorder %s15_s18, 4  }
 0x1fe   :  { %14 = sbr.rel (!%p12_p4) target bundleno = 1 (0x1), region = 70 }

</bundles_post_ra>
